<compile_context>
chip_gen: v7x
topology: tpu7x:2x2x1
jax: 0.10.0
libtpu: 0.0.40
codegen_flags: <defaults>
</compile_context>

<pallas_src>
import functools

import jax
import jax.numpy as jnp
from jax import lax
from jax.experimental import pallas as pl
from jax.experimental.pallas import tpu as pltpu


# ----------------------------- parameter setup ------------------------------

def _ceil_to(x: int, m: int) -> int:
    return ((x + m - 1) // m) * m


def hann_window(win_length: int) -> jnp.ndarray:
    # torch.hann_window(win_length, periodic=True)
    n = jnp.arange(win_length, dtype=jnp.float32)
    return 0.5 - 0.5 * jnp.cos(2.0 * jnp.pi * n / win_length)


def dft_matrices(n_fft: int):
    # Real/imag parts of the DFT basis for the one-sided spectrum.
    n_freq = n_fft // 2 + 1
    n = jnp.arange(n_fft, dtype=jnp.float32)[:, None]
    k = jnp.arange(n_freq, dtype=jnp.float32)[None, :]
    ang = 2.0 * jnp.pi * n * k / n_fft
    return jnp.cos(ang), jnp.sin(ang)  # each (n_fft, n_freq)


def melscale_fbanks(n_freqs, f_min, f_max, n_mels, sample_rate):
    # torchaudio.functional.melscale_fbanks, mel_scale='htk', norm=None.
    def hz_to_mel(f):
        return 2595.0 * jnp.log10(1.0 + f / 700.0)

    def mel_to_hz(m):
        return 700.0 * (10.0 ** (m / 2595.0) - 1.0)

    all_freqs = jnp.linspace(0.0, sample_rate // 2, n_freqs)
    m_pts = jnp.linspace(hz_to_mel(jnp.float32(f_min)),
                         hz_to_mel(jnp.float32(f_max)), n_mels + 2)
    f_pts = mel_to_hz(m_pts)
    f_diff = f_pts[1:] - f_pts[:-1]                         # (n_mels + 1,)
    slopes = f_pts[None, :] - all_freqs[:, None]            # (n_freq, n_mels+2)
    down = (-1.0 * slopes[:, :-2]) / f_diff[:-1]
    up = slopes[:, 2:] / f_diff[1:]
    fb = jnp.maximum(0.0, jnp.minimum(down, up))
    return fb.astype(jnp.float32)                           # (n_freq, n_mels)


def frame_signal(wav, n_fft, hop_length):
    # center=True, pad_mode='reflect' framing (reference path only).
    pad = n_fft // 2
    padded = jnp.pad(wav, ((0, 0), (pad, pad)), mode="reflect")
    num_frames = 1 + wav.shape[1] // hop_length
    idx = (jnp.arange(num_frames)[:, None] * hop_length
           + jnp.arange(n_fft)[None, :])
    return padded[:, idx]                                    # (B, T, n_fft)


# --------------------------------- kernel -----------------------------------

def featurizer_kernel(lens_ref, chunks_ref, dft_ref, fb_ref, out_ref, fr_ref):
    bb, n_chunks, hop = chunks_ref.shape
    num_frames = out_ref.shape[1]
    n_mels = out_ref.shape[2]
    n_splits = n_chunks - num_frames + 1
    # Unbiased-std denominator, clamped so T == 1 gives a finite result
    # (torch would produce NaN in that degenerate case).
    denom = float(max(num_frames - 1, 1))

    # Rebuild the overlapped frames for ALL bb*T rows into the VMEM scratch:
    #   frame[b, t] = concat_k strips[b, t + k],  k = 0 .. n_splits-1
    # Each k is a single lane-offset block copy (no frame duplication in HBM).
    for b in range(bb):
        strips = chunks_ref[b]                               # (n_chunks, hop)
        for k in range(n_splits):
            fr_ref[b * num_frames:(b + 1) * num_frames,
                   k * hop:(k + 1) * hop] = strips[k:k + num_frames, :]

    # One fused, windowed real-DFT matmul for all bb*T frames -> [re | im].
    s = jnp.dot(fr_ref[...], dft_ref[...],
                preferred_element_type=jnp.float32)          # (bb*T, 2*freq_pad)
    sq = s * s                                               # [re^2 | im^2]

    # power @ fb == re^2 @ fb + im^2 @ fb  (filterbank stacked along rows),
    # emitted directly at n_mels columns (no 128-lane output padding).
    mel = jnp.dot(sq, fb_ref[...],
                  preferred_element_type=jnp.float32)        # (bb*T, n_mels)

    # Hoisted iota (JAX does not CSE broadcast_in_dim inside the loop).
    t_idx = lax.broadcasted_iota(jnp.int32, (num_frames, n_mels), 0)

    for b in range(bb):
        mel_b = mel[b * num_frames:(b + 1) * num_frames, :]  # (T, n_mels)

        # per-utterance mean / unbiased std over the time axis
        mean = jnp.mean(mel_b, axis=0, keepdims=True)
        centered = mel_b - mean
        var = jnp.sum(centered * centered, axis=0, keepdims=True) / denom
        inv_std = pl.reciprocal(jnp.sqrt(var) + 1e-5, approx=False)
        normed = centered * inv_std

        # ~make_pad_mask(input_lens): keep t < input_lens[b_global]
        b_global = pl.program_id(0) * bb + b
        mask = (t_idx < lens_ref[b_global]).astype(normed.dtype)
        out_ref[b] = normed * mask


# -------------------------------- wrapper ------------------------------------

@functools.partial(jax.jit, static_argnames=("sample_rate", "n_fft",
                                             "hop_length", "n_mels", "f_max",
                                             "batch_block"))
def audio_featurizer(waveforms, input_lens_ratio, *, sample_rate=16000,
                     n_fft=64, hop_length=32, n_mels=32, f_max=8000.0,
                     batch_block=None):
    # TODO(synk): in-kernel strip framing assumes hop_length divides n_fft
    # (true for the torchaudio default hop = n_fft // 2).
    assert n_fft % hop_length == 0

    batch, length = waveforms.shape
    n_freq = n_fft // 2 + 1
    n_splits = n_fft // hop_length
    num_frames = 1 + length // hop_length
    n_chunks = num_frames + n_splits - 1

    # lane-aligned padded sizes for the fused [re | im] spectrum
    freq_pad = _ceil_to(n_freq, 64)                # 33 -> 64
    lane = 2 * freq_pad                            # 128: [re | im]

    # reflect-pad and reshape into hop-sized strips (no frame duplication).
    # TODO(synk): for long utterances, fuse the reflect pad + reshape into the
    # kernel (memory_space=pl.ANY + boundary handling) and pack strips
    # lane-dense (4 hops / 128-lane row) to cut input DMA / VMEM further.
    wav = waveforms.astype(jnp.float32)
    pad = n_fft // 2
    padded = jnp.pad(wav, ((0, 0), (pad, pad)), mode="reflect")
    needed = n_chunks * hop_length                 # samples actually framed
    chunks = padded[:, :needed].reshape(batch, n_chunks, hop_length)

    # window folded into the fused [cos | sin] DFT matrix
    window = hann_window(n_fft)
    cos_mat, sin_mat = dft_matrices(n_fft)
    dft = jnp.zeros((n_fft, lane), jnp.float32)
    dft = dft.at[:, :n_freq].set(window[:, None] * cos_mat)
    dft = dft.at[:, freq_pad:freq_pad + n_freq].set(window[:, None] * sin_mat)

    # mel filterbank stacked twice along the contraction dim, n_mels columns
    fb = melscale_fbanks(n_freq, 0.0, f_max, n_mels, sample_rate)
    fb_stacked = jnp.zeros((lane, n_mels), jnp.float32)
    fb_stacked = fb_stacked.at[:n_freq, :].set(fb)
    fb_stacked = fb_stacked.at[freq_pad:freq_pad + n_freq, :].set(fb)

    # input_lens = (ratio * feature.shape[1]).int()  (truncation toward zero)
    input_lens = (input_lens_ratio * num_frames).astype(jnp.int32)

    # Batch block: keep >= 2 grid steps whenever batch >= 2 so v7x megacore can
    # shard the "parallel" batch axis; cap the block at 8 to bound VMEM.
    # TODO(synk): make this generation-aware (pltpu.get_tpu_info): on single-TC
    # v5e/v6e a larger bb (fewer grid steps) amortizes per-step overhead better.
    if batch_block is None:
        bb = 1
        for cand in range(min(max(batch // 2, 1), 8), 0, -1):
            if batch % cand == 0:
                bb = cand
                break
    else:
        bb = batch_block
    assert batch % bb == 0, "batch_block must divide batch"
    grid = (batch // bb,)

    # Explicit VMEM budget: double-buffered in/out blocks + constants + the
    # frame scratch, with headroom. Raised above v5e's 16 MiB default; kept
    # well under v7x's 64 MiB physical VMEM.
    blk_chunks = bb * _ceil_to(n_chunks, 8) * _ceil_to(hop_length, 128) * 4
    blk_out = bb * _ceil_to(num_frames, 8) * _ceil_to(n_mels, 128) * 4
    blk_dft = _ceil_to(n_fft, 8) * lane * 4
    blk_fb = lane * _ceil_to(n_mels, 128) * 4
    blk_frames = _ceil_to(bb * num_frames, 8) * _ceil_to(n_fft, 128) * 4
    vmem_needed = 2 * (blk_chunks + blk_out + blk_dft + blk_fb) + blk_frames
    vmem_limit = int(min(max(2 * vmem_needed, 32 * 1024 * 1024),
                         48 * 1024 * 1024))

    out = pl.pallas_call(
        featurizer_kernel,
        out_shape=jax.ShapeDtypeStruct((batch, num_frames, n_mels),
                                       jnp.float32),
        grid_spec=pltpu.PrefetchScalarGridSpec(
            num_scalar_prefetch=1,                 # input_lens -> SMEM
            grid=grid,
            in_specs=[
                pl.BlockSpec((bb, n_chunks, hop_length),
                             lambda i, lens: (i, 0, 0)),
                pl.BlockSpec((n_fft, lane), lambda i, lens: (0, 0)),
                pl.BlockSpec((lane, n_mels), lambda i, lens: (0, 0)),
            ],
            out_specs=pl.BlockSpec((bb, num_frames, n_mels),
                                   lambda i, lens: (i, 0, 0)),
            scratch_shapes=[
                pltpu.VMEM((bb * num_frames, n_fft), jnp.float32),
            ],
        ),
        compiler_params=pltpu.CompilerParams(
            dimension_semantics=("parallel",),
            vmem_limit_bytes=vmem_limit),
    )(input_lens, chunks, dft, fb_stacked)

    return out, input_lens


# ------------------------------ reference ------------------------------------

def audio_featurizer_ref(waveforms, input_lens_ratio, *, sample_rate=16000,
                         n_fft=64, hop_length=32, n_mels=32, f_max=8000.0):
    n_freq = n_fft // 2 + 1
    frames = frame_signal(waveforms.astype(jnp.float32), n_fft, hop_length)
    num_frames = frames.shape[1]
    window = hann_window(n_fft)
    cos_mat, sin_mat = dft_matrices(n_fft)
    fb = melscale_fbanks(n_freq, 0.0, f_max, n_mels, sample_rate)

    fw = frames * window[None, None, :]
    re = jnp.einsum("btn,nf->btf", fw, cos_mat)
    im = jnp.einsum("btn,nf->btf", fw, sin_mat)
    power = re * re + im * im
    mel = jnp.einsum("btf,fm->btm", power, fb)           # (B, T, n_mels)

    mean = jnp.mean(mel, axis=1, keepdims=True)
    var = jnp.sum((mel - mean) ** 2, axis=1, keepdims=True) / (num_frames - 1)
    std = jnp.sqrt(var)
    feat = (mel - mean) / (std + 1e-5)

    input_lens = (input_lens_ratio * num_frames).astype(jnp.int32)
    t_idx = jnp.arange(num_frames)[None, :, None]
    mask = (t_idx < input_lens[:, None, None]).astype(feat.dtype)
    return feat * mask, input_lens


# --------------------------------- main --------------------------------------

if __name__ == "__main__":
    key = jax.random.PRNGKey(0)
    batch, length = 2, 256
    waveforms = jax.random.normal(key, (batch, length), dtype=jnp.float32)
    input_lens_ratio = jnp.array([1.0, 0.6], dtype=jnp.float32)

    feature, input_lens = audio_featurizer(waveforms, input_lens_ratio)
    jax.block_until_ready(feature)
    jax.block_until_ready(input_lens)

    feat_ref, lens_ref = audio_featurizer_ref(waveforms, input_lens_ratio)
    assert feature.shape == feat_ref.shape
    assert jnp.array_equal(input_lens, lens_ref)
    assert jnp.allclose(feature, feat_ref, rtol=1e-4, atol=1e-4)

    print("KERNEL_OK")
</pallas_src>

<mosaic_0001>
module attributes {stable_mosaic.version = 11 : i64} {
  func.func @featurizer_kernel(%arg0: i32, %arg1: memref<2xi32, #tpu.memory_space<smem>>, %arg2: memref<1x10x32xf32, #tpu.memory_space<vmem>>, %arg3: memref<64x128xf32, #tpu.memory_space<vmem>>, %arg4: memref<128x32xf32, #tpu.memory_space<vmem>>, %arg5: memref<1x9x32xf32, #tpu.memory_space<vmem>>, %arg6: memref<9x64xf32, #tpu.memory_space<vmem>>) attributes {dimension_semantics = [#tpu.dimension_semantics<parallel>], iteration_bounds = array<i64: 2>, scalar_prefetch = 1 : i64, scratch_operands = 1 : i64, tpu.core_type = #tpu.core_type<tc>, window_params = [{transform_indices = @transform_0, window_bounds = array<i64: 1, 10, 32>}, {pipeline_mode = #tpu.pipeline_mode<synchronous>, transform_indices = @transform_1, window_bounds = array<i64: 64, 128>}, {pipeline_mode = #tpu.pipeline_mode<synchronous>, transform_indices = @transform_2, window_bounds = array<i64: 128, 32>}, {transform_indices = @transform_3, window_bounds = array<i64: 1, 9, 32>}]} {
    %c0 = arith.constant 0 : index
    %c0_0 = arith.constant 0 : index
    %c0_1 = arith.constant 0 : index
    %0 = vector.load %arg2[%c0, %c0_0, %c0_1] : memref<1x10x32xf32, #tpu.memory_space<vmem>>, vector<1x10x32xf32>
    %1 = vector.shape_cast %0 : vector<1x10x32xf32> to vector<10x32xf32>
    %2 = vector.extract_strided_slice %1 {offsets = [0, 0], sizes = [9, 32], strides = [1, 1]} : vector<10x32xf32> to vector<9x32xf32>
    %c0_2 = arith.constant 0 : index
    %c0_3 = arith.constant 0 : index
    %3 = vector.load %arg6[%c0_2, %c0_3] : memref<9x64xf32, #tpu.memory_space<vmem>>, vector<9x32xf32>
    tpu.vector_store %arg6[%c0_2, %c0_3], %2 {strides = array<i32>} : memref<9x64xf32, #tpu.memory_space<vmem>>, vector<9x32xf32>,
    %4 = vector.extract_strided_slice %1 {offsets = [1, 0], sizes = [9, 32], strides = [1, 1]} : vector<10x32xf32> to vector<9x32xf32>
    %c0_4 = arith.constant 0 : index
    %c32 = arith.constant 32 : index
    %5 = vector.load %arg6[%c0_4, %c32] : memref<9x64xf32, #tpu.memory_space<vmem>>, vector<9x32xf32>
    tpu.vector_store %arg6[%c0_4, %c32], %4 {strides = array<i32>} : memref<9x64xf32, #tpu.memory_space<vmem>>, vector<9x32xf32>,
    %c0_5 = arith.constant 0 : index
    %c0_6 = arith.constant 0 : index
    %6 = vector.load %arg6[%c0_5, %c0_6] : memref<9x64xf32, #tpu.memory_space<vmem>>, vector<9x64xf32>
    %c0_7 = arith.constant 0 : index
    %c0_8 = arith.constant 0 : index
    %7 = vector.load %arg3[%c0_7, %c0_8] : memref<64x128xf32, #tpu.memory_space<vmem>>, vector<64x128xf32>
    %cst = arith.constant dense<0.000000e+00> : vector<9x128xf32>
    %8 = tpu.matmul %6, %7, %cst {dimension_numbers = #tpu.dot_dimension_numbers<[1], [0], [0], [1], [0, 0, 1, 1], [], []>} : vector<9x64xf32>, vector<64x128xf32>, vector<9x128xf32> -> vector<9x128xf32>
    %9 = arith.mulf %8, %8 : vector<9x128xf32>
    %c0_9 = arith.constant 0 : index
    %c0_10 = arith.constant 0 : index
    %10 = vector.load %arg4[%c0_9, %c0_10] : memref<128x32xf32, #tpu.memory_space<vmem>>, vector<128x32xf32>
    %cst_11 = arith.constant dense<0.000000e+00> : vector<9x32xf32>
    %11 = tpu.matmul %9, %10, %cst_11 {dimension_numbers = #tpu.dot_dimension_numbers<[1], [0], [0], [1], [0, 0, 1, 1], [], []>} : vector<9x128xf32>, vector<128x32xf32>, vector<9x32xf32> -> vector<9x32xf32>
    %12 = tpu.iota {dimensions = array<i32: 0>} : vector<9x32xi32>
    %cst_12 = arith.constant dense<0.000000e+00> : vector<32xf32>
    %13 = vector.multi_reduction <add>, %11, %cst_12 [0] : vector<9x32xf32> to vector<32xf32>
    %14 = vector.shape_cast %13 : vector<32xf32> to vector<1x32xf32>
    %cst_13 = arith.constant 9.000000e+00 : f32
    %15 = vector.broadcast %cst_13 : f32 to vector<1x32xf32>
    %16 = arith.divf %14, %15 : vector<1x32xf32>
    %17 = vector.broadcast %16 : vector<1x32xf32> to vector<9x32xf32>
    %18 = arith.subf %11, %17 : vector<9x32xf32>
    %19 = arith.mulf %18, %18 : vector<9x32xf32>
    %cst_14 = arith.constant dense<0.000000e+00> : vector<32xf32>
    %20 = vector.multi_reduction <add>, %19, %cst_14 [0] : vector<9x32xf32> to vector<32xf32>
    %21 = vector.shape_cast %20 : vector<32xf32> to vector<1x32xf32>
    %cst_15 = arith.constant 8.000000e+00 : f32
    %22 = vector.broadcast %cst_15 : f32 to vector<1x32xf32>
    %23 = arith.divf %21, %22 : vector<1x32xf32>
    %24 = math.sqrt %23 : vector<1x32xf32>
    %cst_16 = arith.constant 9.99999974E-6 : f32
    %25 = vector.broadcast %cst_16 : f32 to vector<1x32xf32>
    %26 = arith.addf %24, %25 : vector<1x32xf32>
    %27 = tpu.reciprocal %26 : vector<1x32xf32> -> vector<1x32xf32>
    %28 = vector.broadcast %27 : vector<1x32xf32> to vector<9x32xf32>
    %29 = arith.mulf %18, %28 : vector<9x32xf32>
    %c1_i32 = arith.constant 1 : i32
    %30 = arith.muli %arg0, %c1_i32 : i32
    %c0_i32 = arith.constant 0 : i32
    %31 = arith.addi %30, %c0_i32 : i32
    %32 = arith.index_cast %31 : i32 to index
    %33 = memref.load %arg1[%32] : memref<2xi32, #tpu.memory_space<smem>>
    %34 = vector.broadcast %33 : i32 to vector<9x32xi32>
    %35 = arith.cmpi slt, %12, %34 : vector<9x32xi32>
    %36 = arith.extui %35 : vector<9x32xi1> to vector<9x32xi32>
    %37 = arith.sitofp %36 : vector<9x32xi32> to vector<9x32xf32>
    %38 = arith.mulf %29, %37 : vector<9x32xf32>
    %c0_17 = arith.constant 0 : index
    %c0_18 = arith.constant 0 : index
    %c0_19 = arith.constant 0 : index
    %39 = vector.load %arg5[%c0_17, %c0_18, %c0_19] : memref<1x9x32xf32, #tpu.memory_space<vmem>>, vector<1x9x32xf32>
    %40 = vector.shape_cast %39 : vector<1x9x32xf32> to vector<9x32xf32>
    %41 = vector.shape_cast %38 : vector<9x32xf32> to vector<1x9x32xf32>
    tpu.vector_store %arg5[%c0_17, %c0_18, %c0_19], %41 {strides = array<i32>} : memref<1x9x32xf32, #tpu.memory_space<vmem>>, vector<1x9x32xf32>,
    return
  }
  func.func @transform_0(%arg0: i32, %arg1: memref<2xi32, #tpu.memory_space<smem>>) -> (i32, i32, i32) {
    %c0_i32 = arith.constant 0 : i32
    %c0_i32_0 = arith.constant 0 : i32
    %c0_i32_1 = arith.constant 0 : i32
    return %arg0, %c0_i32, %c0_i32_0 : i32, i32, i32
  }
  func.func @transform_1(%arg0: i32, %arg1: memref<2xi32, #tpu.memory_space<smem>>) -> (i32, i32) {
    %c0_i32 = arith.constant 0 : i32
    %c0_i32_0 = arith.constant 0 : i32
    %c0_i32_1 = arith.constant 0 : i32
    return %c0_i32, %c0_i32_0 : i32, i32
  }
  func.func @transform_2(%arg0: i32, %arg1: memref<2xi32, #tpu.memory_space<smem>>) -> (i32, i32) {
    %c0_i32 = arith.constant 0 : i32
    %c0_i32_0 = arith.constant 0 : i32
    %c0_i32_1 = arith.constant 0 : i32
    return %c0_i32, %c0_i32_0 : i32, i32
  }
  func.func @transform_3(%arg0: i32, %arg1: memref<2xi32, #tpu.memory_space<smem>>) -> (i32, i32, i32) {
    %c0_i32 = arith.constant 0 : i32
    %c0_i32_0 = arith.constant 0 : i32
    %c0_i32_1 = arith.constant 0 : i32
    return %arg0, %c0_i32, %c0_i32_0 : i32, i32, i32
  }
}

</mosaic_0001>

<bundles_post_ra>
// kernel: audio_featurizer.1
= control target key start
LH: loop header
LB: loop body
LE: loop exit
PB: predicated region body
PF: predicated region fallthrough
CT: control target
= control target key end

     0   :  { %s812_s0 = inlined_call_operand.vmem [shape: s32[2], index: 0, kind: input, shape index: {}]   ;;  %s813_s1 = inlined_call_operand.vmem [shape: f32[2,10,32], index: 1, kind: input, shape index: {}]   ;;  %s814_s2 = inlined_call_operand.vmem [shape: f32[64,128], index: 2, kind: input, shape index: {}]   ;;  %s815_s3 = inlined_call_operand.vmem [shape: f32[128,32], index: 3, kind: input, shape index: {}]   ;;  %s816_s4 = inlined_call_operand.vmem [shape: f32[2,9,32], index: 4, kind: output, shape index: {}]  }
   0x1   :  { %s9_s17 = sshll.u32 %s812_s0, 4  ;;  %s10_s17 = int_to_ptr.vmem [resolvable:$true] %s9_s17 }
   0x2   :  { %s650_s18 = scalar_lea.vmem %s10_s17, 16  ;;  %p655_p1 = scmp.lt.s32.totalorder %s10_s17, %s10_s17 }
   0x3   :  { %p651_p0 = scmp.ne.s32.totalorder %s10_s17, %s650_s18  ;;  %p656_p2 = scmp.lt.s32.totalorder %s650_s18, %s650_s18 }
   0x5   :  { %p657_p3 = por %p656_p2, %p655_p1 }
   0x7   :  { %p658_p4 = pnand %p657_p3, %p651_p0 }
   0x9   :  { %661 = shalt.err (!%p658_p4)  }
   0xa   :  { %s672_s19 = smov [#allocation4]  }
   0xb   :  { %12 = dma.vmem_to_smem %s10_s17, 16, %s672_s19, [#allocation3] }
   0xc   :  { %666 = dma.done.wait [#allocation3], 16 }
   0xd   :  { %667 = vsyncadd [#allocation3], 4294967280 }
   0xe   :  { %14 = sfence }
   0xf   :  { %s703_s20 = smov 0  }
  0x10 LB: > { %s709_s0 = sadd.s32 4294967295, %s670_s20   ;;  %p492_p5 = scmp.ge.s32.totalorder %s670_s20, 1  ;;  %s670_s20 = sphi %s703_s20, %s20_s20  }
  0x11   : > { %p144_p6 = scmp.lt.s32.totalorder %s670_s20, 3 }
  0x13   : > { %p145_p7 = pnand %p492_p5, %p144_p6 }
  0x14   : > { %p168_p8 = scmp.lt.s32.totalorder (!%p145_p7), %s709_s0, 1  ;;  %v198_v0 = vld [vmem:[%s814_s2] sm:$0xff] (!%p145_p7)  ;;  %v199_v1 = vld [vmem:[%s814_s2 + $0x8] sm:$0xff] (!%p145_p7)  ;;  %v200_v3 = vld [vmem:[%s814_s2 + $0x10] sm:$0xff] (!%p145_p7)  ;;  %vm180_vm0 = vcmask (!%p145_p7), 261120   ;;  %vm182_vm1 = vcmask (!%p145_p7), 253952  }
  0x15   : > { %148 = sbr.rel (%p145_p7) target bundleno = 662 (0x296), region = 32  ;;  %v587_v2 = vpack.c.bf16 (!%p145_p7), %v199_v1, %v198_v0  ;;  %v201_v4 = vld [vmem:[%s814_s2 + $0x18] sm:$0xff] (!%p145_p7)  ;;  %v202_v6 = vld [vmem:[%s814_s2 + $0x20] sm:$0xff] (!%p145_p7)  ;;  %v203_v7 = vld [vmem:[%s814_s2 + $0x28] sm:$0xff] (!%p145_p7)  ;;  %s673_s16 = smov (!%p145_p7), 32   ;;  %vm192_vm2 = vcmask (!%p145_p7), 523521  }
  0x16   : > { %v591_v5 = vpack.c.bf16 (!%p145_p7), %v201_v4, %v200_v3  ;;  %v595_v8 = vpack.c.bf16 (!%p145_p7), %v203_v7, %v202_v6  ;;  %v204_v9 = vld [vmem:[%s814_s2 + $0x30] sm:$0xff] (!%p145_p7)  ;;  %v205_v12 = vld [vmem:[%s814_s2 + $0x38] sm:$0xff] (!%p145_p7)  ;;  %v290_v13 = vld [vmem:[%s815_s3] sm:$0xff] (!%p145_p7)  ;;  %vm194_vm3 = vcmask (!%p145_p7), 517376   ;;  %vm206_vm4 = vcmask (!%p145_p7), 523264   ;;  %s421_s27 = sld [smem:[#allocation4 + %s709_s0]] (!%p145_p7) }
  0x17   : > { %588 = vmatprep.subr.bf16.mxu0 (!%p145_p7), %v587_v2  ;;  %v291_v14 = vld [vmem:[%s815_s3 + $0x8] sm:$0xff] (!%p145_p7)  ;;  %v292_v15 = vld [vmem:[%s815_s3 + $0x10] sm:$0xff] (!%p145_p7)  ;;  %v293_v17 = vld [vmem:[%s815_s3 + $0x18] sm:$0xff] (!%p145_p7)  ;;  %v599_v18 = vpack.c.bf16 (!%p145_p7), %v205_v12, %v204_v9 }
  0x18   : > { %590 = vmatpush3.bf16.msra.mxu0 (!%p145_p7), %v587_v2  ;;  %v603_v16 = vpack.c.bf16 (!%p145_p7), %v291_v14, %v290_v13  ;;  %v607_v19 = vpack.c.bf16 (!%p145_p7), %v293_v17, %v292_v15  ;;  %v294_v20 = vld [vmem:[%s815_s3 + $0x20] sm:$0xff] (!%p145_p7)  ;;  %v295_v21 = vld [vmem:[%s815_s3 + $0x28] sm:$0xff] (!%p145_p7)  ;;  %v296_v23 = vld [vmem:[%s815_s3 + $0x30] sm:$0xff] (!%p145_p7) }
  0x19   : > { %592 = vmatprep.subr.bf16.mxu0 (!%p145_p7), %v591_v5  ;;  %v611_v22 = vpack.c.bf16 (!%p145_p7), %v295_v21, %v294_v20  ;;  %v297_v24 = vld [vmem:[%s815_s3 + $0x38] sm:$0xff] (!%p145_p7)  ;;  %v298_v26 = vld [vmem:[%s815_s3 + $0x40] sm:$0xff] (!%p145_p7)  ;;  %v299_v27 = vld [vmem:[%s815_s3 + $0x48] sm:$0xff] (!%p145_p7) }
  0x1a   : > { %604 = vmatprep.subr.bf16.mxu1 (!%p145_p7), %v603_v16  ;;  %v615_v25 = vpack.c.bf16 (!%p145_p7), %v297_v24, %v296_v23  ;;  %v619_v28 = vpack.c.bf16 (!%p145_p7), %v299_v27, %v298_v26  ;;  %v300_v29 = vld [vmem:[%s815_s3 + $0x50] sm:$0xff] (!%p145_p7)  ;;  %v301_v30 = vld [vmem:[%s815_s3 + $0x58] sm:$0xff] (!%p145_p7)  ;;  %v302_v32 = vld [vmem:[%s815_s3 + $0x60] sm:$0xff] (!%p145_p7) }
  0x1b   : > { %606 = vmatpush3.bf16.msra.mxu1 (!%p145_p7), %v603_v16  ;;  %v623_v31 = vpack.c.bf16 (!%p145_p7), %v301_v30, %v300_v29  ;;  %v303_v33 = vld [vmem:[%s815_s3 + $0x68] sm:$0xff] (!%p145_p7)  ;;  %v304_v39 = vld [vmem:[%s815_s3 + $0x70] sm:$0xff] (!%p145_p7)  ;;  %v305_v40 = vld [vmem:[%s815_s3 + $0x78] sm:$0xff] (!%p145_p7) }
  0x1c   : > { %s727_s29 = scalar_select %p168_p8, %s709_s0, 1  ;;  %594 = vmatpush3.bf16.msra.mxu0 %v591_v5  ;;  %608 = vmatprep.subr.bf16.mxu1 %v607_v19  ;;  %v627_v34 = vpack.c.bf16 %v303_v33, %v302_v32  ;;  %v631_v41 = vpack.c.bf16 %v305_v40, %v304_v39  ;;  %v422_v17 = vstv %s421_s27 }
  0x1d   : > { %596 = vmatprep.subr.bf16.mxu0 %v595_v8 }
  0x1e   : > { %s503_s8 = sshll.u32 %s727_s29, 4 }
  0x1f   : > { %s172_s11 = scalar_lea.vmem %s813_s1, %s503_s8  ;;  %610 = vmatpush3.bf16.msra.mxu1 %v607_v19  ;;  %v674_v19 = vmov 0.0   ;;  %s177_s5 = scalar_lea.vmem %s816_s4, %s503_s8 }
  0x20   : > { %v178_v10 = vld [vmem:[%s172_s11] sm:$0xff]  ;;  %v179_v11 = vld [vmem:[%s172_s11 + $0x8] sm:$0x3]  ;;  %598 = vmatpush3.bf16.msra.mxu0 %v595_v8  ;;  %612 = vmatprep.subr.bf16.mxu1 %v611_v22 }
  0x21   : > { %186 = vrot.lane.b32.xlu0 %v178_v10, %s673_s16  ;;  %181 = vst.msk [vmem:[#allocation2] sm:$0xff] %vm180_vm0, %v178_v10  ;;  %600 = vmatprep.subr.bf16.mxu0 %v599_v18  ;;  %v381_v10 = vlaneseq }
  0x22   : > { %183 = vst.msk [vmem:[#allocation2 + $0x8] sm:$0x1] %vm182_vm1, %v179_v11 }
  0x23   : > { %614 = vmatpush3.bf16.msra.mxu1 %v611_v22  ;;  %v382_v15 = vshrl.u32 %v381_v10, 7 }
  0x24   : > { %602 = vmatpush3.bf16.msra.mxu0 %v599_v18  ;;  %616 = vmatprep.subr.bf16.mxu1 %v615_v25 }
  0x25   : > { %188 = vrot.lane.b32.xlu0 %v179_v11, %s673_s16  ;;  %v383_v16 = vadd.s32 8, %v382_v15  ;;  %vm423_vm7 = vcmp.lt.s32.totalorder %v382_v15, %v422_v17 }
  0x26   : > { %v499_v20 = vsel %vm423_vm7, 1.0, %v674_v19 }
  0x27   : > { %618 = vmatpush3.bf16.msra.mxu1 %v615_v25  ;;  %vm424_vm8 = vcmp.lt.s32.totalorder %v383_v16, %v422_v17 }
  0x28   : > { %620 = vmatprep.subr.bf16.mxu1 %v619_v28  ;;  %v500_v21 = vsel %vm424_vm8, 1.0, %v674_v19 }
  0x2b   : > { %622 = vmatpush3.bf16.msra.mxu1 %v619_v28 }
  0x2c   : > { %624 = vmatprep.subr.bf16.mxu1 %v623_v31 }
  0x2f   : > { %626 = vmatpush3.bf16.msra.mxu1 %v623_v31 }
  0x30   : > { %628 = vmatprep.subr.bf16.mxu1 %v627_v34 }
  0x33   : > { %630 = vmatpush3.bf16.msra.mxu1 %v627_v34 }
  0x34   : > { %632 = vmatprep.subr.bf16.mxu1 %v631_v41 }
  0x37   : > { %634 = vmatpush3.bf16.msra.mxu1 %v631_v41 }
  0x93   : > { %v187_v35 = vpop.permute.xlu0 %186 }
  0x94   : > { %193 = vst.msk [vmem:[#allocation2 - $0x1] sm:$0xfe] %vm192_vm2, %v187_v35 }
  0x97   : > { %v189_v36 = vpop.permute.xlu0 %188 }
  0x98   : > { %195 = vst.msk [vmem:[#allocation2 + $0x7] sm:$0x3] %vm194_vm3, %v189_v36 }
  0x9f   : > { %v196_v37 = vld [vmem:[#allocation2] sm:$0xff]  ;;  %v197_v38 = vld [vmem:[#allocation2 + $0x8] sm:$0x1] }
  0xa0   : > { %549 = vmatprep.mubr.msk.f32.mxu0 %vm206_vm4, %v196_v37 }
  0xa1   : > { %550 = vmatmul.mubr.msk.f32.vlgmr.msra.gmra.mrb[0].mxu0 %vm206_vm4, %v197_v38 }
 0x174   : > { %v551_v42 = vpop.f32.mrb[0].mxu0 }
 0x175   : > { %v279_v43 = vpop.f32.mrb[1].mxu0  ;;  %v289_v45 = vmul.f32 %v551_v42, %v551_v42 }
 0x176   : > { %v288_v44 = vmul.f32 %v279_v43, %v279_v43 }
 0x178   : > { %584 = vmatprep.mubr.f32.mxu1 %v288_v44 }
 0x179   : > { %585 = vmatmul.mubr.f32.vlgmr.msra.gmra.mrb[0].mxu1 %v289_v45 }
 0x24c   : > { %v586_v46 = vpop.f32.mrb[0].mxu1 }
 0x24d   : > { %v385_v47 = vsel %vm182_vm1, %v586_v46, 0.0  ;;  %v372_v48 = vpop.f32.mrb[1].mxu1 }
 0x24e   : > { %v384_v49 = vsel %vm180_vm0, %v372_v48, 0.0 }
 0x24f   : > { %v386_v50 = vadd.f32 %v385_v47, %v384_v49 }
 0x251   : > { %v387_v51 = vrot.slane %v386_v50, 4 }
 0x253   : > { %v388_v52 = vadd.f32 %v387_v51, %v386_v50 }
 0x255   : > { %v389_v53 = vrot.slane %v388_v52, 2 }
 0x257   : > { %v390_v54 = vadd.f32 %v389_v53, %v388_v52 }
 0x259   : > { %v391_v55 = vrot.slane %v390_v54, 1 }
 0x25b   : > { %v392_v56 = vadd.f32 %v391_v55, %v390_v54 }
 0x25d   : > { %v394_v57 = vmul.f32 0.11111111, %v392_v56 }
 0x25f   : > { %v395_v58 = vsub.f32 %v372_v48, %v394_v57  ;;  %v396_v59 = vsub.f32 %v586_v46, %v394_v57 }
 0x261   : > { %v397_v60 = vmul.f32 %v395_v58, %v395_v58  ;;  %v398_v61 = vmul.f32 %v396_v59, %v396_v59 }
 0x263   : > { %v399_v62 = vsel %vm180_vm0, %v397_v60, 0.0  ;;  %v400_v63 = vsel %vm182_vm1, %v398_v61, 0.0 }
 0x264   : > { %v401_v0 = vadd.f32 %v400_v63, %v399_v62 }
 0x266   : > { %v402_v1 = vrot.slane %v401_v0, 4 }
 0x268   : > { %v403_v2 = vadd.f32 %v402_v1, %v401_v0 }
 0x26a   : > { %v404_v3 = vrot.slane %v403_v2, 2 }
 0x26c   : > { %v405_v4 = vadd.f32 %v404_v3, %v403_v2 }
 0x26e   : > { %v406_v5 = vrot.slane %v405_v4, 1 }
 0x270   : > { %v407_v6 = vadd.f32 %v406_v5, %v405_v4 }
 0x272   : > { %v409_v7 = vmul.f32 0.125, %v407_v6 }
 0x274   : > { %646 = vrsqrt.f32 %v409_v7  ;;  %vm412_vm5 = vcmp.eq.f32.partialorder %v409_v7, inf  ;;  %v415_v11 = vand.u32 2147483648, %v409_v7  ;;  %vm414_vm6 = vcmp.eq.f32.partialorder %v409_v7, 0.0 }
 0x27e   : > { %v647_v8 = vpop.eup %646 }
 0x27f   : > { %v411_v9 = vmul.f32 %v647_v8, %v409_v7 }
 0x281   : > { %v413_v12 = vsel %vm412_vm5, %v409_v7, %v411_v9 }
 0x282   : > { %v416_v13 = vsel %vm414_vm6, %v415_v11, %v413_v12 }
 0x283   : > { %v417_v14 = vadd.f32 1e-05, %v416_v13 }
 0x285   : > { %648 = vrcp.f32 %v417_v14 }
 0x28f   : > { %v649_v18 = vpop.eup %648 }
 0x290   : > { %v419_v22 = vmul.f32 %v649_v18, %v395_v58  ;;  %v420_v23 = vmul.f32 %v649_v18, %v396_v59 }
 0x292   : > { %v429_v24 = vmul.f32 %v499_v20, %v419_v22  ;;  %v430_v25 = vmul.f32 %v500_v21, %v420_v23 }
 0x294   : > { %431 = vst.msk [vmem:[%s177_s5] sm:$0xff] %vm180_vm0, %v429_v24 }
 0x295   : > { %432 = vst.msk [vmem:[%s177_s5 + $0x8] sm:$0x1] %vm182_vm1, %v430_v25 }
 0x296 PF: > { %s20_s20 = sadd.s32 1, %s670_s20  }
 0x297   : > { %p17_p9 = scmp.ge.s32.totalorder %s20_s20, 4  }
 0x299   :  { %19 = sbr.rel (!%p17_p9) target bundleno = 16 (0x10), region = 62 }

</bundles_post_ra>
